<compile_context>
chip_gen: v6e
topology: v6e:2x2x1
jax: 0.10.0
libtpu: 0.0.40
codegen_flags: <defaults>
</compile_context>

<pallas_src>
import math

import jax
import jax.numpy as jnp
from jax.experimental import pallas as pl
from jax.experimental.pallas import tpu as pltpu

_HIGHEST = jax.lax.Precision.HIGHEST


# ----------------------------------------------------------------------------
# Hardware-aware VMEM budgeting / tiling
# ----------------------------------------------------------------------------

def _vmem_ceiling_bytes():
    """Generation-aware ceiling for vmem_limit_bytes.

    v5e/v6e have 128 MiB VMEM per TensorCore -> cap at 96 MiB; v7x has 64 MiB
    -> cap at 48 MiB (headroom for compiler-internal scratch).  Conservative
    48 MiB fallback if the query is unavailable.
    """
    try:
        cap = int(pltpu.get_tpu_info().vmem_capacity_bytes)
    except Exception:
        return 48 * 1024 * 1024
    return max(32 * 1024 * 1024, min(96 * 1024 * 1024, cap - 16 * 1024 * 1024))


def _lane_round(c):
    return ((c + 127) // 128) * 128


def _pick_spatial_tile(hw, bytes_per_row, budget_bytes, cap_rows=2048):
    """Largest spatial tile (multiple of 8) fitting the VMEM budget.

    Prefers an exact divisor of `hw` near the target (avoids a ragged last
    block); otherwise returns a multiple-of-8 tile and lets Pallas mask the
    boundary block (grid uses pl.cdiv)."""
    max_rows = int(budget_bytes // max(1, bytes_per_row))
    target = max(8, min(hw, max_rows, cap_rows))
    if target >= hw:
        return hw                                  # full dim: always legal
    t = max(8, (target // 8) * 8)
    lo = max(8, ((t // 2) // 8) * 8)
    for cand in range(t, lo - 1, -8):              # prefer an exact divisor
        if hw % cand == 0:
            return cand
    return t                                       # ragged last block (masked)


def _resident_spec(shape):
    """VMEM-resident operand: constant index map + single buffer."""
    return pl.BlockSpec(shape, lambda b, g, p, s: (0,) * len(shape),
                        pipeline_mode=pl.Buffered(1))


# ----------------------------------------------------------------------------
# Weight folding:  proj(inv_permute(fc(permute(x))))  ==  per-frame linear map
# ----------------------------------------------------------------------------

def _fold_stage_weights(w_fc, b_fc, w_proj, b_proj, S):
    """Fold one stage into a linear map on the segment's S stacked frames.

    Returns:
      w4: (S, S, C, C)  w4[s_in, s_out] maps input frame s_in -> output s_out
      b2: (S, C)        bias per output frame
    """
    C = w_fc.shape[0]
    if C % S:
        raise ValueError("embed_dim must be divisible by segment_lens")
    Cs = C // S
    wp4 = w_proj.reshape(C, S, Cs)          # [c_out, k, r]   proj[c_out, k*Cs+r]
    wfc4 = w_fc.reshape(S, Cs, S, Cs)       # [s, r, t, q]    fc[s*Cs+r, t*Cs+q]
    w6 = jnp.einsum('ikr,srtq->tskqi', wp4, wfc4, precision=_HIGHEST)
    w4 = w6.reshape(S, S, C, C)             # [s_in, s_out, c_in, c_out]
    b2 = jnp.einsum('ikr,sr->si', wp4, b_fc.reshape(S, Cs), precision=_HIGHEST)
    b2 = b2 + b_proj[None, :]
    return w4, b2


def _compose_stages(w_win, b_win, w_sft, b_sft, S, shift):
    """Compose window_fc followed by the (rolled) shift_fc into one linear map
    from 2 adjacent input segments onto the S rolled output frames of one
    shift-segment (valid when D % S == 0).

    Returns:
      wc: (2*S*S, C, C)   flat index (a*S + s_in)*S + t_out;
                          a=0 -> previous segment (h-1 mod G), a=1 -> segment h
      bc: (S, 1, C)
    """
    C = w_win.shape[-1]
    wc = jnp.zeros((2, S, S, C, C), w_win.dtype)
    bc = b_sft
    for t_in in range(S):
        m = (t_in - shift) % S
        a = 0 if t_in < shift else 1
        # x[seg_a, s_in] @ w_win[s_in, m] @ w_sft[t_in, t_out]
        contrib = jnp.einsum('sij,tjk->stik', w_win[:, m], w_sft[t_in],
                             precision=_HIGHEST)
        wc = wc.at[a].add(contrib)
        bc = bc + jnp.einsum('j,tjk->tk', b_win[m], w_sft[t_in],
                             precision=_HIGHEST)
    return wc.reshape(2 * S * S, C, C), bc.reshape(S, 1, C)


def timemixing_fc_fold_params(params, segment_lens=2, weight_dtype=None):
    """Precompute folded per-stage and composed two-stage weights ONCE (outside
    the per-call forward).  Optionally cast the large weights to
    `weight_dtype` (e.g. jnp.bfloat16) to halve HBM/VMEM traffic."""
    S = segment_lens
    shift = S // 2
    w1, b1 = _fold_stage_weights(params["lr_w"], params["lr_b"],
                                 params["proj_w"], params["proj_b"], S)
    w2, b2 = _fold_stage_weights(params["sw_w"], params["sw_b"],
                                 params["proj_s_w"], params["proj_s_b"], S)
    wc, bc = _compose_stages(w1, b1, w2, b2, S, shift)
    C = w1.shape[-1]
    cast = (lambda w: w.astype(weight_dtype)) if weight_dtype is not None \
        else (lambda w: w)
    return {
        "win_w": cast(w1.reshape(S * S, C, C)), "win_b": b1.reshape(S, 1, C),
        "sft_w": cast(w2.reshape(S * S, C, C)), "sft_b": b2.reshape(S, 1, C),
        "fused_w": cast(wc), "fused_b": bc,
    }


# ----------------------------------------------------------------------------
# Pallas kernels
# ----------------------------------------------------------------------------

def _make_stage_kernel(S):
    """Single-stage kernel.  Grid step (b, g, p, s_out): output frame s_out of
    segment g for one spatial tile.  Input index maps are independent of
    s_out, so their DMAs are reused across the S inner grid steps."""
    def kernel(*refs):
        x_refs = refs[:S]
        w_ref, b_ref, o_ref = refs[S], refs[S + 1], refs[S + 2]
        s_out = pl.program_id(3)
        acc = None
        for s_in in range(S):                      # static, unrolled
            d = jnp.dot(x_refs[s_in][0, 0], w_ref[s_in * S + s_out],
                        preferred_element_type=jnp.float32)
            acc = d if acc is None else acc + d
        o_ref[0, 0] = (acc + b_ref[s_out]).astype(o_ref.dtype)
    return kernel


def _make_fused_kernel(S):
    """Fused two-stage kernel.  Grid step (b, h, p, t_out): one output frame of
    shift-segment h from the 2 adjacent input segments (prev, cur)."""
    def kernel(xp_ref, xc_ref, w_ref, b_ref, o_ref):
        t_out = pl.program_id(3)
        xs = (xp_ref, xc_ref)
        acc = None
        for a in range(2):                         # static, unrolled
            for s_in in range(S):
                d = jnp.dot(xs[a][0, s_in], w_ref[(a * S + s_in) * S + t_out],
                            preferred_element_type=jnp.float32)
                acc = d if acc is None else acc + d
        o_ref[0, 0] = (acc + b_ref[t_out]).astype(o_ref.dtype)
    return kernel


# ----------------------------------------------------------------------------
# pallas_call wrappers
# ----------------------------------------------------------------------------

def _fused_two_stage(x3, w_flat, bias3, *, S, shift, vmem_ceiling):
    """Main path: out = shift_fc(window_fc(x)) in ONE pallas_call (D % S == 0)."""
    B, D, HW, C = x3.shape
    G = D // S
    itemsize = jnp.dtype(x3.dtype).itemsize
    wsize = jnp.dtype(w_flat.dtype).itemsize
    c_lanes = _lane_round(C)
    w_bytes = (2 * S * S * C + S * 8) * c_lanes * wsize          # single-buffered
    # per spatial row: 2 segment refs x 2 buffers x S frames + output x 2 buffers
    row_bytes = (2 * 2 * S + 2) * c_lanes * itemsize
    budget = max(8 * row_bytes, vmem_ceiling - w_bytes - (4 << 20))
    t_hw = _pick_spatial_tile(HW, row_bytes, budget)
    P = pl.cdiv(HW, t_hw)

    return pl.pallas_call(
        _make_fused_kernel(S),
        out_shape=jax.ShapeDtypeStruct((B, D, HW, C), x3.dtype),
        grid=(B, G, P, S),
        in_specs=[
            # previous input segment (mod G) and current segment, coalesced DMAs
            pl.BlockSpec((1, S, t_hw, C),
                         lambda b, h, p, s: (b, (h + G - 1) % G, p, 0)),
            pl.BlockSpec((1, S, t_hw, C),
                         lambda b, h, p, s: (b, h, p, 0)),
            _resident_spec((2 * S * S, C, C)),
            _resident_spec((S, 1, C)),
        ],
        out_specs=pl.BlockSpec(
            (1, 1, t_hw, C),
            lambda b, h, p, s: (b, (h * S + s - shift + D) % D, p, 0)),
        compiler_params=pltpu.CompilerParams(
            dimension_semantics=("parallel", "parallel", "parallel", "arbitrary"),
            vmem_limit_bytes=int(vmem_ceiling)),
    )(x3, x3, w_flat, bias3)


def _mix_stage(x3, w_flat, bias3, *, S, shift, vmem_ceiling):
    """One fused stage (fallback path).  Temporal roll / frame-0 padding are
    folded into the index maps."""
    B, D, HW, C = x3.shape
    Dp = D if D % S == 0 else D + 1                # reference appends one frame
    G = Dp // S
    itemsize = jnp.dtype(x3.dtype).itemsize
    wsize = jnp.dtype(w_flat.dtype).itemsize
    c_lanes = _lane_round(C)
    w_bytes = (S * S * C + S * 8) * c_lanes * wsize
    row_bytes = (2 * S + 2) * c_lanes * itemsize
    budget = max(8 * row_bytes, vmem_ceiling - w_bytes - (4 << 20))
    t_hw = _pick_spatial_tile(HW, row_bytes, budget)
    P = pl.cdiv(HW, t_hw)
    fold_roll = (Dp == D)                          # can fold the output un-roll
    out_D = D if fold_roll else Dp

    def make_in_map(s_in):
        def imap(b, g, p, s):
            # rolled/padded frame (g*S + s_in) -> source frame of x; the mod D
            # also resolves the "append a copy of rolled frame 0" padding.
            return (b, (g * S + s_in - shift + D) % D, p, 0)
        return imap

    if fold_roll:
        def out_map(b, g, p, s):
            return (b, (g * S + s - shift + D) % D, p, 0)
    else:
        def out_map(b, g, p, s):
            return (b, g * S + s, p, 0)

    out = pl.pallas_call(
        _make_stage_kernel(S),
        out_shape=jax.ShapeDtypeStruct((B, out_D, HW, C), x3.dtype),
        grid=(B, G, P, S),
        in_specs=(
            [pl.BlockSpec((1, 1, t_hw, C), make_in_map(s_in)) for s_in in range(S)]
            + [_resident_spec((S * S, C, C)), _resident_spec((S, 1, C))]),
        out_specs=pl.BlockSpec((1, 1, t_hw, C), out_map),
        compiler_params=pltpu.CompilerParams(
            dimension_semantics=("parallel", "parallel", "parallel", "arbitrary"),
            vmem_limit_bytes=int(vmem_ceiling)),
    )(*([x3] * S), w_flat, bias3)

    if not fold_roll:
        # TODO(synk): fold this slice + roll into the out_map (skip the padded
        # frame's store) to save an extra HBM pass on the odd-D path.
        out = out[:, :D]
        if shift:
            out = jnp.roll(out, -shift, axis=1)
    return out


# ----------------------------------------------------------------------------
# Forward (TimemixingFC): out = shift_fc(window_fc(x))
# ----------------------------------------------------------------------------

def timemixing_fc_forward(x, folded, segment_lens=2):
    """x: (B, D, H, W, C) channels-last; folded = timemixing_fc_fold_params(...)."""
    S = segment_lens
    shift = S // 2
    B, D, H, W, C = x.shape
    ceiling = _vmem_ceiling_bytes()
    x3 = x.reshape(B, D, H * W, C)                 # free reshape

    fused_w = folded["fused_w"]
    c_lanes = _lane_round(C)
    fused_w_bytes = ((fused_w.shape[0] * C + S * 8) * c_lanes
                     * jnp.dtype(fused_w.dtype).itemsize)

    if D % S == 0 and fused_w_bytes <= (6 * ceiling) // 10:
        # Main path: window_fc + shift_fc composed into a single pallas_call
        # (no intermediate activation round-trip through HBM).
        y3 = _fused_two_stage(x3, fused_w, folded["fused_b"],
                              S=S, shift=shift, vmem_ceiling=ceiling)
    else:
        # Fallback: odd frame count (reference pads with a copy of frame 0) or
        # composed weights too large to keep VMEM-resident.
        # TODO(synk): stream the composed weights over a K grid axis instead of
        # falling back to two passes for very large embed dims.
        y3 = _mix_stage(x3, folded["win_w"], folded["win_b"],
                        S=S, shift=0, vmem_ceiling=ceiling)
        y3 = _mix_stage(y3, folded["sft_w"], folded["sft_b"],
                        S=S, shift=shift, vmem_ceiling=ceiling)
    return y3.reshape(B, D, H, W, C)


# ----------------------------------------------------------------------------
# Pure-JAX reference (literal transcription of the PyTorch module)
# ----------------------------------------------------------------------------

def _linear_ref(x, w, b):
    return jnp.einsum('...i,oi->...o', x, w, precision=_HIGHEST) + b


def _stage_ref(x, w_fc, b_fc, w_proj, b_proj, S):
    B, D, H, W, C = x.shape
    padded = False
    if D % S != 0:
        x = jnp.concatenate([x, x[:, 0:1]], axis=1)
        D += 1
        padded = True
    chunk = S
    z = x.reshape(B, D // S, S, H, W, chunk, C // chunk)
    z = jnp.transpose(z, (0, 1, 5, 3, 4, 2, 6)).reshape(B, D, H, W, C)
    z = _linear_ref(z, w_fc, b_fc)
    z = z.reshape(B, D // S, chunk, H, W, S, C // chunk)
    z = jnp.transpose(z, (0, 1, 5, 3, 4, 2, 6)).reshape(B, D, H, W, C)
    z = _linear_ref(z, w_proj, b_proj)
    if padded:
        z = z[:, :D - 1]
    return z


def timemixing_fc_ref(x, params, segment_lens=2):
    S = segment_lens
    shift = S // 2
    y = _stage_ref(x, params["lr_w"], params["lr_b"],
                   params["proj_w"], params["proj_b"], S)          # window_fc
    y = jnp.roll(y, shift, axis=1)
    y = _stage_ref(y, params["sw_w"], params["sw_b"],
                   params["proj_s_w"], params["proj_s_b"], S)      # shift_fc core
    return jnp.roll(y, -shift, axis=1)


# ----------------------------------------------------------------------------
# Deterministic nn.Linear-style init
# ----------------------------------------------------------------------------

def init_params(dim, key):
    def lin(k):
        bound = 1.0 / math.sqrt(dim)
        kw, kb = jax.random.split(k)
        w = jax.random.uniform(kw, (dim, dim), jnp.float32, -bound, bound)
        b = jax.random.uniform(kb, (dim,), jnp.float32, -bound, bound)
        return w, b
    k1, k2, k3, k4 = jax.random.split(key, 4)
    lr_w, lr_b = lin(k1)
    sw_w, sw_b = lin(k2)
    pj_w, pj_b = lin(k3)
    ps_w, ps_b = lin(k4)
    return {"lr_w": lr_w, "lr_b": lr_b,
            "sw_w": sw_w, "sw_b": sw_b,
            "proj_w": pj_w, "proj_b": pj_b,
            "proj_s_w": ps_w, "proj_s_b": ps_b}


if __name__ == "__main__":
    B, D, H, W, C = 2, 8, 8, 8, 16
    S = 2

    key = jax.random.PRNGKey(0)
    kx, kp, kx2 = jax.random.split(key, 3)
    x = jax.random.normal(kx, (B, D, H, W, C), jnp.float32)
    params = init_params(C, kp)

    # Folded / composed weights are precomputed once (not inside the forward).
    folded = timemixing_fc_fold_params(params, segment_lens=S)
    fwd = jax.jit(timemixing_fc_forward, static_argnames=("segment_lens",))

    # Main path: even D -> single fused pallas_call for both stages.
    out = jax.block_until_ready(fwd(x, folded, segment_lens=S))
    assert out.shape == (B, D, H, W, C)
    ref = timemixing_fc_ref(x, params, segment_lens=S)
    tol = 1e-2 * max(1.0, float(jnp.max(jnp.abs(ref))))
    err = float(jnp.max(jnp.abs(out - ref)))
    assert err < tol, f"mismatch vs reference (fused even-D path): {err}"

    # Odd frame count exercises the module's "append copy of frame 0" path
    # (two-stage fallback with rolls/padding folded into the index maps).
    D2 = 7
    x2 = jax.random.normal(kx2, (B, D2, H, W, C), jnp.float32)
    out2 = jax.block_until_ready(fwd(x2, folded, segment_lens=S))
    ref2 = timemixing_fc_ref(x2, params, segment_lens=S)
    tol2 = 1e-2 * max(1.0, float(jnp.max(jnp.abs(ref2))))
    err2 = float(jnp.max(jnp.abs(out2 - ref2)))
    assert err2 < tol2, f"mismatch vs reference (odd-D fallback): {err2}"

    print("KERNEL_OK")
</pallas_src>

<mosaic_0001>
module attributes {stable_mosaic.version = 11 : i64} {
  func.func @kernel(%arg0: i32, %arg1: i32, %arg2: i32, %arg3: i32, %arg4: memref<1x2x64x16xf32, #tpu.memory_space<vmem>>, %arg5: memref<1x2x64x16xf32, #tpu.memory_space<vmem>>, %arg6: memref<8x16x16xf32, #tpu.memory_space<vmem>>, %arg7: memref<2x1x16xf32, #tpu.memory_space<vmem>>, %arg8: memref<1x1x64x16xf32, #tpu.memory_space<vmem>>) attributes {dimension_semantics = [#tpu.dimension_semantics<parallel>, #tpu.dimension_semantics<parallel>, #tpu.dimension_semantics<parallel>, #tpu.dimension_semantics<arbitrary>], iteration_bounds = array<i64: 2, 4, 1, 2>, scalar_prefetch = 0 : i64, scratch_operands = 0 : i64, tpu.core_type = #tpu.core_type<tc>, window_params = [{transform_indices = @transform_0, window_bounds = array<i64: 1, 2, 64, 16>}, {transform_indices = @transform_1, window_bounds = array<i64: 1, 2, 64, 16>}, {pipeline_mode = #tpu.pipeline_mode<synchronous>, transform_indices = @transform_2, window_bounds = array<i64: 8, 16, 16>}, {pipeline_mode = #tpu.pipeline_mode<synchronous>, transform_indices = @transform_3, window_bounds = array<i64: 2, 1, 16>}, {transform_indices = @transform_4, window_bounds = array<i64: 1, 1, 64, 16>}]} {
    %c0 = arith.constant 0 : index
    %c0_0 = arith.constant 0 : index
    %c0_1 = arith.constant 0 : index
    %c0_2 = arith.constant 0 : index
    %0 = vector.load %arg4[%c0, %c0_0, %c0_1, %c0_2] : memref<1x2x64x16xf32, #tpu.memory_space<vmem>>, vector<1x1x64x16xf32>
    %1 = vector.shape_cast %0 : vector<1x1x64x16xf32> to vector<64x16xf32>
    %c0_i32 = arith.constant 0 : i32
    %2 = arith.addi %c0_i32, %arg3 : i32
    %3 = arith.index_cast %2 : i32 to index
    %c0_3 = arith.constant 0 : index
    %c0_4 = arith.constant 0 : index
    %4 = vector.load %arg6[%3, %c0_3, %c0_4] : memref<8x16x16xf32, #tpu.memory_space<vmem>>, vector<1x16x16xf32>
    %5 = vector.shape_cast %4 : vector<1x16x16xf32> to vector<16x16xf32>
    %cst = arith.constant dense<0.000000e+00> : vector<64x16xf32>
    %6 = tpu.matmul %1, %5, %cst {dimension_numbers = #tpu.dot_dimension_numbers<[1], [0], [0], [1], [0, 0, 1, 1], [], []>} : vector<64x16xf32>, vector<16x16xf32>, vector<64x16xf32> -> vector<64x16xf32>
    %c0_5 = arith.constant 0 : index
    %c1 = arith.constant 1 : index
    %c0_6 = arith.constant 0 : index
    %c0_7 = arith.constant 0 : index
    %7 = vector.load %arg4[%c0_5, %c1, %c0_6, %c0_7] : memref<1x2x64x16xf32, #tpu.memory_space<vmem>>, vector<1x1x64x16xf32>
    %8 = vector.shape_cast %7 : vector<1x1x64x16xf32> to vector<64x16xf32>
    %c2_i32 = arith.constant 2 : i32
    %9 = arith.addi %c2_i32, %arg3 : i32
    %10 = arith.index_cast %9 : i32 to index
    %c0_8 = arith.constant 0 : index
    %c0_9 = arith.constant 0 : index
    %11 = vector.load %arg6[%10, %c0_8, %c0_9] : memref<8x16x16xf32, #tpu.memory_space<vmem>>, vector<1x16x16xf32>
    %12 = vector.shape_cast %11 : vector<1x16x16xf32> to vector<16x16xf32>
    %cst_10 = arith.constant dense<0.000000e+00> : vector<64x16xf32>
    %13 = tpu.matmul %8, %12, %cst_10 {dimension_numbers = #tpu.dot_dimension_numbers<[1], [0], [0], [1], [0, 0, 1, 1], [], []>} : vector<64x16xf32>, vector<16x16xf32>, vector<64x16xf32> -> vector<64x16xf32>
    %14 = arith.addf %6, %13 : vector<64x16xf32>
    %c0_11 = arith.constant 0 : index
    %c0_12 = arith.constant 0 : index
    %c0_13 = arith.constant 0 : index
    %c0_14 = arith.constant 0 : index
    %15 = vector.load %arg5[%c0_11, %c0_12, %c0_13, %c0_14] : memref<1x2x64x16xf32, #tpu.memory_space<vmem>>, vector<1x1x64x16xf32>
    %16 = vector.shape_cast %15 : vector<1x1x64x16xf32> to vector<64x16xf32>
    %c4_i32 = arith.constant 4 : i32
    %17 = arith.addi %c4_i32, %arg3 : i32
    %18 = arith.index_cast %17 : i32 to index
    %c0_15 = arith.constant 0 : index
    %c0_16 = arith.constant 0 : index
    %19 = vector.load %arg6[%18, %c0_15, %c0_16] : memref<8x16x16xf32, #tpu.memory_space<vmem>>, vector<1x16x16xf32>
    %20 = vector.shape_cast %19 : vector<1x16x16xf32> to vector<16x16xf32>
    %cst_17 = arith.constant dense<0.000000e+00> : vector<64x16xf32>
    %21 = tpu.matmul %16, %20, %cst_17 {dimension_numbers = #tpu.dot_dimension_numbers<[1], [0], [0], [1], [0, 0, 1, 1], [], []>} : vector<64x16xf32>, vector<16x16xf32>, vector<64x16xf32> -> vector<64x16xf32>
    %22 = arith.addf %14, %21 : vector<64x16xf32>
    %c0_18 = arith.constant 0 : index
    %c1_19 = arith.constant 1 : index
    %c0_20 = arith.constant 0 : index
    %c0_21 = arith.constant 0 : index
    %23 = vector.load %arg5[%c0_18, %c1_19, %c0_20, %c0_21] : memref<1x2x64x16xf32, #tpu.memory_space<vmem>>, vector<1x1x64x16xf32>
    %24 = vector.shape_cast %23 : vector<1x1x64x16xf32> to vector<64x16xf32>
    %c6_i32 = arith.constant 6 : i32
    %25 = arith.addi %c6_i32, %arg3 : i32
    %26 = arith.index_cast %25 : i32 to index
    %c0_22 = arith.constant 0 : index
    %c0_23 = arith.constant 0 : index
    %27 = vector.load %arg6[%26, %c0_22, %c0_23] : memref<8x16x16xf32, #tpu.memory_space<vmem>>, vector<1x16x16xf32>
    %28 = vector.shape_cast %27 : vector<1x16x16xf32> to vector<16x16xf32>
    %cst_24 = arith.constant dense<0.000000e+00> : vector<64x16xf32>
    %29 = tpu.matmul %24, %28, %cst_24 {dimension_numbers = #tpu.dot_dimension_numbers<[1], [0], [0], [1], [0, 0, 1, 1], [], []>} : vector<64x16xf32>, vector<16x16xf32>, vector<64x16xf32> -> vector<64x16xf32>
    %30 = arith.addf %22, %29 : vector<64x16xf32>
    %31 = arith.index_cast %arg3 : i32 to index
    %c0_25 = arith.constant 0 : index
    %c0_26 = arith.constant 0 : index
    %32 = vector.load %arg7[%31, %c0_25, %c0_26] : memref<2x1x16xf32, #tpu.memory_space<vmem>>, vector<1x1x16xf32>
    %33 = vector.shape_cast %32 : vector<1x1x16xf32> to vector<1x16xf32>
    %34 = vector.broadcast %33 : vector<1x16xf32> to vector<64x16xf32>
    %35 = arith.addf %30, %34 : vector<64x16xf32>
    %c0_27 = arith.constant 0 : index
    %c0_28 = arith.constant 0 : index
    %c0_29 = arith.constant 0 : index
    %c0_30 = arith.constant 0 : index
    %36 = vector.load %arg8[%c0_27, %c0_28, %c0_29, %c0_30] : memref<1x1x64x16xf32, #tpu.memory_space<vmem>>, vector<1x1x64x16xf32>
    %37 = vector.shape_cast %36 : vector<1x1x64x16xf32> to vector<64x16xf32>
    %38 = vector.shape_cast %35 : vector<64x16xf32> to vector<1x1x64x16xf32>
    tpu.vector_store %arg8[%c0_27, %c0_28, %c0_29, %c0_30], %38 {strides = array<i32>} : memref<1x1x64x16xf32, #tpu.memory_space<vmem>>, vector<1x1x64x16xf32>,
    return
  }
  func.func @transform_0(%arg0: i32, %arg1: i32, %arg2: i32, %arg3: i32) -> (i32, i32, i32, i32) {
    %c4_i32 = arith.constant 4 : i32
    %0 = arith.addi %arg1, %c4_i32 : i32
    %c1_i32 = arith.constant 1 : i32
    %1 = arith.subi %0, %c1_i32 : i32
    %c4_i32_0 = arith.constant 4 : i32
    %c0_i32 = arith.constant 0 : i32
    %2 = arith.cmpi eq, %c4_i32_0, %c0_i32 : i32
    %c1_i32_1 = arith.constant 1 : i32
    %3 = arith.select %2, %c1_i32_1, %c4_i32_0 : i32
    %4 = arith.remsi %1, %3 : i32
    %c0_i32_2 = arith.constant 0 : i32
    %5 = arith.cmpi ne, %4, %c0_i32_2 : i32
    %c0_i32_3 = arith.constant 0 : i32
    %6 = arith.cmpi slt, %4, %c0_i32_3 : i32
    %c0_i32_4 = arith.constant 0 : i32
    %7 = arith.cmpi slt, %3, %c0_i32_4 : i32
    %8 = arith.xori %6, %7 : i1
    %9 = arith.andi %8, %5 : i1
    %10 = arith.addi %4, %3 : i32
    %11 = arith.select %9, %10, %4 : i32
    %c0_i32_5 = arith.constant 0 : i32
    %c0_i32_6 = arith.constant 0 : i32
    return %arg0, %11, %arg2, %c0_i32_5 : i32, i32, i32, i32
  }
  func.func @transform_1(%arg0: i32, %arg1: i32, %arg2: i32, %arg3: i32) -> (i32, i32, i32, i32) {
    %c0_i32 = arith.constant 0 : i32
    %c0_i32_0 = arith.constant 0 : i32
    return %arg0, %arg1, %arg2, %c0_i32 : i32, i32, i32, i32
  }
  func.func @transform_2(%arg0: i32, %arg1: i32, %arg2: i32, %arg3: i32) -> (i32, i32, i32) {
    %c0_i32 = arith.constant 0 : i32
    %c0_i32_0 = arith.constant 0 : i32
    %c0_i32_1 = arith.constant 0 : i32
    %c0_i32_2 = arith.constant 0 : i32
    return %c0_i32, %c0_i32_0, %c0_i32_1 : i32, i32, i32
  }
  func.func @transform_3(%arg0: i32, %arg1: i32, %arg2: i32, %arg3: i32) -> (i32, i32, i32) {
    %c0_i32 = arith.constant 0 : i32
    %c0_i32_0 = arith.constant 0 : i32
    %c0_i32_1 = arith.constant 0 : i32
    %c0_i32_2 = arith.constant 0 : i32
    return %c0_i32, %c0_i32_0, %c0_i32_1 : i32, i32, i32
  }
  func.func @transform_4(%arg0: i32, %arg1: i32, %arg2: i32, %arg3: i32) -> (i32, i32, i32, i32) {
    %c2_i32 = arith.constant 2 : i32
    %0 = arith.muli %arg1, %c2_i32 : i32
    %1 = arith.addi %0, %arg3 : i32
    %c1_i32 = arith.constant 1 : i32
    %2 = arith.subi %1, %c1_i32 : i32
    %c8_i32 = arith.constant 8 : i32
    %3 = arith.addi %2, %c8_i32 : i32
    %c8_i32_0 = arith.constant 8 : i32
    %c0_i32 = arith.constant 0 : i32
    %4 = arith.cmpi eq, %c8_i32_0, %c0_i32 : i32
    %c1_i32_1 = arith.constant 1 : i32
    %5 = arith.select %4, %c1_i32_1, %c8_i32_0 : i32
    %6 = arith.remsi %3, %5 : i32
    %c0_i32_2 = arith.constant 0 : i32
    %7 = arith.cmpi ne, %6, %c0_i32_2 : i32
    %c0_i32_3 = arith.constant 0 : i32
    %8 = arith.cmpi slt, %6, %c0_i32_3 : i32
    %c0_i32_4 = arith.constant 0 : i32
    %9 = arith.cmpi slt, %5, %c0_i32_4 : i32
    %10 = arith.xori %8, %9 : i1
    %11 = arith.andi %10, %7 : i1
    %12 = arith.addi %6, %5 : i32
    %13 = arith.select %11, %12, %6 : i32
    %c0_i32_5 = arith.constant 0 : i32
    %c0_i32_6 = arith.constant 0 : i32
    return %arg0, %13, %arg2, %c0_i32_5 : i32, i32, i32, i32
  }
}

</mosaic_0001>

<bundles_post_ra>
// kernel: timemixing_fc_forward.1
= control target key start
LH: loop header
LB: loop body
LE: loop exit
PB: predicated region body
PF: predicated region fallthrough
CT: control target
= control target key end

     0   :  { %s2342_s0 = inlined_call_operand.hbm [shape: f32[2,8,64,16], index: 0, kind: input, shape index: {}, may-alias: {0,1}]   ;;  %s2343_s1 = inlined_call_operand.hbm [shape: f32[2,8,64,16], index: 1, kind: input, shape index: {}, may-alias: {0,1}]   ;;  %s2344_s2 = inlined_call_operand.hbm [shape: f32[8,16,16], index: 2, kind: input, shape index: {}]   ;;  %s2345_s3 = inlined_call_operand.vmem [shape: f32[2,1,16], index: 3, kind: input, shape index: {}]   ;;  %s2346_s4 = inlined_call_operand.hbm [shape: f32[2,8,64,16], index: 4, kind: output, shape index: {}]  }
   0x1   :  { %2376 = sst [smem:[#allocation27_spill]] %s2343_s1 }
   0x2   :  { %2377 = sst [smem:[#allocation28_spill]] %s2344_s2 }
   0x3   :  { %2378 = sst [smem:[#allocation29_spill]] %s2345_s3 }
   0x4   :  { %2379 = sst [smem:[#allocation30_spill]] %s2346_s4 }
   0x5   :  { %9 = vsyncpa [#allocation3], 0 }
   0x6   :  { %11 = vsyncpa [#allocation3 + $0x1], 0 }
   0x7   :  { %12 = vsyncpa [#allocation6], 0 }
   0x8   :  { %14 = vsyncpa [#allocation6 + $0x1], 0 }
   0x9   :  { %15 = vsyncpa [#allocation4], 0 }
   0xa   :  { %17 = vsyncpa [#allocation4 + $0x1], 0  ;;  %s1874_s15 = smov 0   ;;  %s1876_s16 = smov 0  }
   0xb   :  { %s1878_s17 = smov 0   ;;  %s1880_s18 = smov 0  }
   0xc   :  { %s1882_s19 = smov 0   ;;  %s1884_s20 = smov 0  }
   0xd   :  { %s1886_s21 = smov 0   ;;  %s1888_s22 = smov 0  }
   0xe   :  { %s1890_s23 = smov 0   ;;  %s1892_s24 = smov 0  }
   0xf   :  { %s1894_s25 = smov 0   ;;  %s1896_s26 = smov 0  }
  0x10   :  { %s1898_s27 = smov 0   ;;  %s1900_s28 = smov 0  }
  0x11   :  { %s1902_s29 = smov 0   ;;  %s1904_s30 = smov 0  }
  0x12 LB: > { %2380 = sst [smem:[#allocation13_spill]] %s1779_s15  ;;  %s1951_s5 = sadd.s32 4294967295, %s1839_s30   ;;  %s1839_s30 = sphi %s1904_s30, %s23_s30   ;;  %s1835_s29 = sphi %s1902_s29, %s2451_s29   ;;  %s1831_s28 = sphi %s1900_s28, %s2450_s28   ;;  %s1827_s27 = sphi %s1898_s27, %s2449_s27   ;;  %s1823_s26 = sphi %s1896_s26, %s2448_s26   ;;  %s1819_s25 = sphi %s1894_s25, %s2447_s25   ;;  %s1815_s24 = sphi %s1892_s24, %s2446_s24   ;;  %s1811_s23 = sphi %s1890_s23, %s2445_s23   ;;  %s1807_s22 = sphi %s1888_s22, %s2444_s22   ;;  %s1803_s21 = sphi %s1886_s21, %s2434_s21   ;;  %s1799_s20 = sphi %s1884_s20, %s2443_s20   ;;  %s1795_s19 = sphi %s1882_s19, %s2442_s19   ;;  %s1791_s18 = sphi %s1880_s18, %s2441_s18   ;;  %s1787_s17 = sphi %s1878_s17, %s2440_s17   ;;  %s1783_s16 = sphi %s1876_s16, %s2439_s16   ;;  %s1779_s15 = sphi %s1874_s15, %s2433_s15  }
  0x13   : > { %2381 = sst [smem:[#allocation14_spill]] %s1783_s16  ;;  %s1216_s6 = sadd.s32 4294967294, %s1839_s30  }
  0x14   : > { %2382 = sst [smem:[#allocation15_spill]] %s1807_s22  ;;  %p99_p0 = scmp.ne.s32.totalorder %s1807_s22, %s1803_s21 }
  0x15   : > { %2383 = sst [smem:[#allocation16_spill]] %s1815_s24  ;;  %p2371_p1 = scmp.eq.s32.totalorder %s1951_s5, 0 }
  0x16   : > { %2384 = sst [smem:[#allocation17_spill]] %s1819_s25  ;;  %p129_p2 = scmp.ne.s32.totalorder %s1795_s19, %s1791_s18 }
  0x17   : > { %2385 = sst [smem:[#allocation18_spill]] %s1823_s26  ;;  %p1960_p3 = por %p2371_p1, %p99_p0 }
  0x18   : > { %2386 = sst [smem:[#allocation19_spill]] %s1951_s5  ;;  %p228_p4 = scmp.ne.s32.totalorder %s1787_s17, %s1783_s16 }
  0x19   : > { %s2387_s8 = scalar_select %p1960_p3, 1, 0 }
  0x1a   : > { %p1968_p5 = por %p129_p2, %p2371_p1  ;;  %p229_p6 = scmp.eq.s32.totalorder %s1951_s5, 15 }
  0x1b   : > { %2388 = sst [smem:[#allocation20_spill]] %s2387_s8  ;;  %p234_p7 = scmp.ne.s32.totalorder %s1783_s16, %s1779_s15 }
  0x1c   : > { %s2389_s9 = scalar_select %p1968_p5, 1, 0 }
  0x1d   : > { %p235_p8 = scmp.eq.s32.totalorder %s1216_s6, 15  ;;  %p1975_p9 = por %p229_p6, %p228_p4 }
  0x1e   : > { %2390 = sst [smem:[#allocation21_spill]] %s2389_s9  ;;  %p1231_p10 = scmp.ge.s32.totalorder %s1839_s30, 1 }
  0x1f   : > { %s2391_s10 = scalar_select %p1975_p9, 1, 0 }
  0x20   : > { %p1980_p11 = por %p235_p8, %p234_p7  ;;  %p242_p12 = scmp.lt.s32.totalorder %s1839_s30, 17 }
  0x21   : > { %2392 = sst [smem:[#allocation22_spill]] %s2391_s10  ;;  %s1841_s13 = smov [#allocation7]  }
  0x22   : > { %s2393_s11 = scalar_select %p1980_p11, 1, 0 }
  0x23   : > { %p1985_p13 = pnand %p1231_p10, %p242_p12  ;;  %s254_s14 = sshll.u32 %s1841_s13, 4  ;;  %s255_s14 = int_to_ptr.vmem [resolvable:$true] %s254_s14 }
  0x24   : > { %2394 = sst [smem:[#allocation23_spill]] %s2393_s11  ;;  %s1600_s18 = scalar_lea.vmem %s255_s14, 2048 }
  0x25   : > { %s2395_s12 = scalar_select %p1985_p13, 1, 0 }
  0x26   : > { %p1437_p0 = pneg %p1985_p13  ;;  %p1601_p6 = scmp.ne.s32.totalorder %s255_s14, %s1600_s18 }
  0x27   : > { %2396 = sst [smem:[#allocation24_spill]] %s2395_s12  ;;  %p1608_p9 = scmp.lt.s32.totalorder %s255_s14, %s255_s14 }
  0x28   : > { %p1438_p2 = pnand %p1437_p0, %p2371_p1  ;;  %p1609_p11 = scmp.lt.s32.totalorder %s1600_s18, %s1600_s18 }
  0x2a   : > { %p1591_p4 = pneg %p1438_p2  ;;  %p1610_p5 = por %p1609_p11, %p1608_p9 }
  0x2c   : > { %p1603_p7 = pnand %p1601_p6, %p1591_p4 }
  0x2e   : > { %p1604_p8 = pneg %p1603_p7 }
  0x30   : > { %p1611_p10 = pnand %p1610_p5, %p1604_p8 }
  0x32   : > { %1614 = shalt.err (!%p1611_p10)
}
  0x33   : > { %s2356_s21 = smov 128   ;;  %s2358_s6 = smov 8  }
  0x34   : > { %s2397_s2 = sld [smem:[#allocation28_spill]]  ;;  %s38_s18 = sadd.s32 1, %s1827_s27 }
  0x35   : > { %p39_p9 = scmp.ge.s32.totalorder %s38_s18, 2  ;;  %s45_s11 = sadd.s32 1, %s1831_s28 }
  0x36   : > { %s49_s15 = sadd.s32 1, %s1835_s29  ;;  %s53_s4 = sadd.s32 3, %s1831_s28 }
  0x37   : > { %s2453_s18 = smov (%p39_p9, %s38_s18), 0  ;;  %s2455_s11 = smov (!%p39_p9, %s45_s11), %s1831_s28 }
  0x38   : > { %s55_s10 = ssub.s32 0, %s53_s4  ;;  %p47_p5 = scmp.ge.s32.totalorder %s2455_s11, 4 }
  0x39   : > { %s1217_s26 = smin.u32 %s55_s10, %s53_s4  ;;  %p93_p0 = scmp.ne.s32.totalorder %s1811_s23, %s1807_s22 }
  0x3a   : > { %1440 = dma.hbm_to_vmem [thread:$0]  (!%p1438_p2), %s2397_s2, 2048, %s255_s14, [#allocation6], %s2356_s21, %s2356_s21, %s2358_s6  }
  0x3b   : > { %s57_s3 = sand.u32 3, %s1217_s26   ;;  %s2457_s11 = smov (%p47_p5, %s2455_s11), 0 }
  0x3c   : > { %2398 = sst [smem:[#allocation25_spill]] %s2457_s11  ;;  %s2459_s15 = smov (!%p47_p5, %s49_s15), %s1835_s29 }
  0x3d   : > { %s66_s7 = sadd.s32 3, %s2457_s11  ;;  %p51_p11 = scmp.ge.s32.totalorder %s2459_s15, 2 }
  0x3e   : > { %p1219_p12 = scmp.lt.s32.totalorder %s57_s3, 0  ;;  %s64_s14 = sadd.s32 4, %s57_s3 }
  0x3f   : > { %s2461_s15 = smov (%p51_p11, %s2459_s15), 0  ;;  %s68_s4 = ssub.s32 0, %s66_s7 }
  0x40   : > { %2399 = sst [smem:[#allocation26_spill]] %s2461_s15  ;;  %s2015_s26 = ssub.s32 %s1835_s29, %s2461_s15 }
  0x41   : > { %s2463_s14 = smov (!%p1219_p12, %s64_s14), %s57_s3  ;;  %s1220_s10 = smin.u32 %s68_s4, %s66_s7 }
  0x42   : > { %s70_s13 = sand.u32 3, %s1220_s10   ;;  %p2373_p2 = scmp.eq.s32.totalorder %s1839_s30, 0 }
  0x43   : > { %s110_s21 = ssub.s32 %s1831_s28, %s2457_s11  ;;  %p1222_p6 = scmp.lt.s32.totalorder %s70_s13, 0 }
  0x44   : > { %p2026_p4 = por %p2373_p2, %p93_p0  ;;  %s2031_s16 = sor.u32 %s110_s21, %s2015_s26 }
  0x45   : > { %s77_s3 = sadd.s32 4, %s70_s13  ;;  %s1223_s7 = sshll.u32 %s1831_s28, 1 }
  0x46   : > { %s2465_s3 = smov (!%p1222_p6, %s77_s3), %s70_s13  ;;  %s182_s4 = sadd.s32 %s1827_s27, %s1223_s7 }
  0x47   : > { %s1227_s10 = sshll.u32 %s2457_s11, 1  ;;  %s80_s2 = ssub.s32 %s2463_s14, %s2465_s3 }
  0x48   : > { %s183_s15 = sadd.s32 7, %s182_s4  ;;  %s81_s25 = sor.u32 %s80_s2, %s2015_s26 }
  0x49   : > { %p84_p8 = scmp.eq.s32.totalorder %s81_s25, 0  ;;  %s185_s24 = ssub.s32 0, %s183_s15 }
  0x4a   : > { %s1224_s9 = smin.u32 %s185_s24, %s183_s15  ;;  %s197_s5 = sadd.s32 %s1227_s10, %s2453_s18 }
  0x4b   : > { %s2401_s21 = sadd.s32 1, %s1811_s23  ;;  %s187_s22 = sand.u32 7, %s1224_s9  }
  0x4c   : > { %s2043_s8 = scalar_select %p84_p8, %s1811_s23, %s2401_s21  }
  0x4d   : > { %s198_s12 = sadd.s32 7, %s197_s5  ;;  %p2372_p10 = scmp.lt.s32.totalorder %s1839_s30, 16 }
  0x4e   : > { %s200_s1 = ssub.s32 0, %s198_s12  ;;  %p1226_p9 = scmp.lt.s32.totalorder %s187_s22, 0 }
  0x4f   : > { %s194_s13 = sadd.s32 8, %s187_s22  ;;  %s1228_s7 = smin.u32 %s200_s1, %s198_s12 }
  0x50   : > { %s271_s3 = sand.u32 1, %s1811_s23   ;;  %s2467_s13 = smov (!%p1226_p9, %s194_s13), %s187_s22 }
  0x51   : > { %s202_s2 = sand.u32 7, %s1228_s7   ;;  %s1234_s25 = sshll.u32 %s271_s3, 7 }
  0x52   : > { %s1321_s15 = sshll.u32 %s2463_s14, 4  ;;  %p1230_p5 = scmp.lt.s32.totalorder %s202_s2, 0 }
  0x53   : > { %s209_s24 = sadd.s32 8, %s202_s2  ;;  %s1240_s9 = sshll.u32 %s1835_s29, 6 }
  0x54   : > { %s275_s5 = scalar_lea.vmem [#allocation2], %s1234_s25  ;;  %s2469_s24 = smov (!%p1230_p5, %s209_s24), %s202_s2 }
  0x55   : > { %s300_s4 = sshll.u32 %s275_s5, 4  ;;  %s297_s10 = sadd.s32 %s1321_s15, %s1240_s9  ;;  %s2049_s4 = int_to_ptr.vmem [resolvable:$true] %s300_s4 }
  0x56   : > { %s212_s1 = ssub.s32 %s2467_s13, %s2469_s24  ;;  %s1241_s12 = sshll.u32 %s297_s10, 7 }
  0x57   : > { %s213_s22 = sor.u32 %s212_s1, %s2015_s26  ;;  %s2055_s11 = scalar_lea.hbm %s2342_s0, %s1241_s12 }
  0x58   : > { %p216_p11 = scmp.eq.s32.totalorder %s213_s22, 0  ;;  %p2061_p12 = pnand %p2372_p10, %p2026_p4 }
  0x59   : > { %s1322_s2 = sshll.u32 %s1831_s28, 4  ;;  %s2403_s13 = sadd.s32 1, %s1787_s17 }
  0x5a   : > { %s2069_s25 = scalar_select %p216_p11, %s1787_s17, %s2403_s13  }
  0x5b   : > { %s2071_s26 = sadd.s32 %s1322_s2, %s1240_s9  ;;  %s2073_s15 = scalar_lea.sflag [#allocation3], %s271_s3 }
  0x5c   : > { %s1615_s24 = scalar_lea.hbm %s2055_s11, 2048  ;;  %p1617_p6 = pneg %p2061_p12 }
  0x5d   : > { %p1616_p0 = scmp.ne.s32.totalorder %s2055_s11, %s1615_s24  ;;  %s1620_s10 = scalar_lea.hbm %s2342_s0, 16384 }
  0x5e   : > { %p1621_p4 = scmp.lt.s32.totalorder %s2055_s11, %s2342_s0  ;;  %p1622_p5 = scmp.lt.s32.totalorder %s1620_s10, %s1615_s24 }
  0x5f   : > { %p1618_p8 = pnand %p1617_p6, %p1616_p0 }
  0x60   : > { %p1623_p11 = por %p1622_p5, %p1621_p4 }
  0x61   : > { %p1619_p9 = pneg %p1618_p8 }
  0x63   : > { %p1624_p1 = pnand %p1623_p11, %p1619_p9 }
  0x65   : > { %1627 = shalt.err (!%p1624_p1)
}
  0x66   : > { %s1628_s3 = scalar_lea.vmem %s2049_s4, 2048  ;;  %s1844_s9 = smov [#allocation2]  }
  0x67   : > { %p1629_p10 = scmp.ne.s32.totalorder %s2049_s4, %s1628_s3  ;;  %s1633_s22 = sshll.u32 %s1844_s9, 4  ;;  %s1634_s22 = int_to_ptr.vmem [resolvable:$false] %s1633_s22 }
  0x68   : > { %s1635_s21 = scalar_lea.vmem %s1634_s22, 4096  ;;  %p1636_p8 = scmp.lt.s32.totalorder %s2049_s4, %s1634_s22 }
  0x69   : > { %p1631_p2 = pnand %p1629_p10, %p1617_p6  ;;  %p1637_p7 = scmp.lt.s32.totalorder %s1635_s21, %s1628_s3 }
  0x6b   : > { %p1632_p0 = pneg %p1631_p2  ;;  %p1638_p3 = por %p1637_p7, %p1636_p8 }
  0x6d   : > { %p1639_p13 = pnand %p1638_p3, %p1632_p0 }
  0x6f   : > { %1642 = shalt.err (!%p1639_p13)
}
  0x70   : > { %s2404_s7 = smov 8   ;;  %s2405_s2 = smov 128  }
  0x71   : > { %1444 = dma.hbm_to_vmem [thread:$0]  (!%p2061_p12), %s2055_s11, 2048, %s2049_s4, %s2073_s15, %s2405_s2, %s2405_s2, %s2404_s7  }
  0x72   : > { %s1246_s13 = sshll.u32 %s2071_s26, 7  ;;  %s116_s24 = sadd.s32 1, %s1799_s20 }
  0x73   : > { %p2406_p1 = scmp.eq.s32.totalorder %s2031_s16, 0  ;;  %p123_p3 = scmp.ne.s32.totalorder %s1799_s20, %s1795_s19 }
  0x74   : > { %s310_s6 = sand.u32 1, %s1839_s30   ;;  %s2407_s1 = sld [smem:[#allocation27_spill]] }
  0x75   : > { %s2102_s14 = scalar_select %p2406_p1, %s1799_s20, %s116_s24  }
  0x76   : > { %s312_s3 = sand.u32 1, %s1799_s20   ;;  %p2408_p13 = scmp.eq.s32.totalorder %s1839_s30, 0 }
  0x77   : > { %s1242_s9 = sshll.u32 %s312_s3, 7  ;;  %p2409_p7 = scmp.lt.s32.totalorder %s1839_s30, 16 }
  0x78   : > { %p125_p2 = por %p123_p3, %p2408_p13  ;;  %s314_s22 = scalar_lea.vmem [#allocation5], %s1242_s9 }
  0x79   : > { %s326_s21 = sshll.u32 %s314_s22, 4  ;;  %s311_s16 = scalar_lea.sflag [#allocation6], %s310_s6  ;;  %s327_s21 = int_to_ptr.vmem [resolvable:$true] %s326_s21 }
  0x7a   : > { %s325_s12 = scalar_lea.hbm %s2407_s1, %s1246_s13  ;;  %p2115_p10 = pnand %p2409_p7, %p125_p2 }
  0x7b   : > { %s1656_s4 = scalar_lea.vmem %s327_s21, 2048  ;;  %s1845_s26 = smov [#allocation5]  }
  0x7c   : > { %p1645_p12 = pneg %p2115_p10  ;;  %p1657_p6 = scmp.ne.s32.totalorder %s327_s21, %s1656_s4 }
  0x7d   : > { %s1661_s15 = sshll.u32 %s1845_s26, 4  ;;  %s1662_s15 = int_to_ptr.vmem [resolvable:$false] %s1661_s15 }
  0x7e   : > { %p1659_p9 = pnand %p1657_p6, %p1645_p12  ;;  %s1663_s13 = scalar_lea.vmem %s1662_s15, 4096 }
  0x7f   : > { %p1664_p5 = scmp.lt.s32.totalorder %s327_s21, %s1662_s15  ;;  %p1665_p11 = scmp.lt.s32.totalorder %s1663_s13, %s1656_s4 }
  0x80   : > { %p1660_p4 = pneg %p1659_p9 }
  0x81   : > { %p1666_p0 = por %p1665_p11, %p1664_p5 }
  0x83   : > { %p1667_p8 = pnand %p1666_p0, %p1660_p4 }
  0x85   : > { %1670 = shalt.err (!%p1667_p8)
}
  0x86   : > { %1447 = dma.hbm_to_vmem [thread:$0]  (!%p2115_p10), %s325_s12, 2048, %s327_s21, %s311_s16, %s2405_s2, %s2405_s2, %s2404_s7  }
  0x87   : > { %s2411_s24 = sld [smem:[#allocation24_spill]] }
  0x8d   : > { %p2412_p1 = scmp.ne.s32.totalorder %s2411_s24, 0 }
  0x8e   : > { %s2413_s6 = sld [smem:[#allocation15_spill]] (!%p2412_p1) }
  0x8f   : > { %338 = sbr.rel (%p2412_p1) target bundleno = 422 (0x1a6), region = 36  ;;  %s2414_s5 = sld [smem:[#allocation20_spill]] (!%p2412_p1) }
  0x94   : > { %s340_s10 = sand.u32 1, %s2413_s6  }
  0x95   : > { %s1248_s1 = sshll.u32 %s340_s10, 7  ;;  %s341_s3 = scalar_lea.sflag [#allocation3], %s340_s10 }
  0x96   : > { %s2129_s9 = scalar_lea.vmem [#allocation2], %s1248_s1  ;;  %p2415_p3 = scmp.ne.s32.totalorder %s2414_s5, 0 }
  0x98   : > { %1762 = dma.done.wait (%p2415_p3), %s341_s3, 2048  }
  0x99   : > { %1764 = vsyncadd (%p2415_p3), %s341_s3, 4294965248  ;;  %s2416_s22 = sld [smem:[#allocation19_spill]]  ;;  %s351_s7 = sand.u32 1, %s1795_s19  }
  0x9a   : > { %s2417_s11 = sld [smem:[#allocation21_spill]]  ;;  %s1249_s2 = sshll.u32 %s351_s7, 7 }
  0x9b   : > { %s2137_s21 = scalar_lea.vmem [#allocation5], %s1249_s2 }
  0x9f   : > { %s349_s4 = sand.u32 1, %s2416_s22  }
  0xa0   : > { %s350_s12 = scalar_lea.sflag [#allocation6], %s349_s4  ;;  %p2418_p13 = scmp.ne.s32.totalorder %s2417_s11, 0 }
  0xa2   : > { %1766 = dma.done.wait (%p2418_p13), %s350_s12, 2048  }
  0xa3   : > { %1768 = vsyncadd (%p2418_p13), %s350_s12, 4294965248  ;;  %p2419_p2 = scmp.eq.s32.totalorder %s2416_s22, 0 }
  0xa5   : > { %1770 = dma.done.wait (%p2419_p2), [#allocation6], 2048   ;;  %p2420_p7 = pmov %p2419_p2 }
  0xa6   : > { %s2421_s16 = sld [smem:[#allocation16_spill]]  ;;  %v1253_v4 = vld [vmem:[%s2129_s9 + $0x40] sm:$0xff]  ;;  %vm446_vm0 = vcmask 130048   ;;  %v1254_v6 = vld [vmem:[%s2129_s9 + $0x48] sm:$0xff]  ;;  %v1255_v10 = vld [vmem:[%s2129_s9 + $0x50] sm:$0xff] }
  0xa7   : > { %1772 = vsyncadd (%p2420_p7), [#allocation6], 4294965248  ;;  %v420_v5 = vld [vmem:[%s2129_s9] sm:$0xff]  ;;  %v421_v7 = vld [vmem:[%s2129_s9 + $0x8] sm:$0xff]  ;;  %1367 = vmatprep.mubr.msk.f32.mxu0 %vm446_vm0, %v1253_v4  ;;  %s2422_s13 = sld [smem:[#allocation17_spill]] }
  0xa8   : > { %1383 = vmatprep.mubr.msk.f32.mxu1 %vm446_vm0, %v420_v5  ;;  %v422_v11 = vld [vmem:[%s2129_s9 + $0x10] sm:$0xff]  ;;  %v1256_v12 = vld [vmem:[%s2129_s9 + $0x58] sm:$0xff]  ;;  %v1257_v14 = vld [vmem:[%s2129_s9 + $0x60] sm:$0xff]  ;;  %s2423_s1 = sld [smem:[#allocation14_spill]] }
  0xa9   : > { %v423_v13 = vld [vmem:[%s2129_s9 + $0x18] sm:$0xff]  ;;  %v424_v15 = vld [vmem:[%s2129_s9 + $0x20] sm:$0xff]  ;;  %v1258_v18 = vld [vmem:[%s2129_s9 + $0x68] sm:$0xff]  ;;  %s2424_s2 = sld [smem:[#allocation29_spill]] }
  0xaa   : > { %v425_v19 = vld [vmem:[%s2129_s9 + $0x28] sm:$0xff]  ;;  %v1259_v20 = vld [vmem:[%s2129_s9 + $0x70] sm:$0xff]  ;;  %v1260_v22 = vld [vmem:[%s2129_s9 + $0x78] sm:$0xff]  ;;  %s2427_s4 = sld [smem:[#allocation30_spill]] }
  0xab   : > { %v426_v21 = vld [vmem:[%s2129_s9 + $0x30] sm:$0xff]  ;;  %v427_v23 = vld [vmem:[%s2129_s9 + $0x38] sm:$0xff]  ;;  %v705_v24 = vld [vmem:[%s2137_s21] sm:$0xff] }
  0xac   : > { %s1252_s26 = sshll.u32 %s2421_s16, 4  ;;  %v1291_v25 = vld [vmem:[%s2137_s21 + $0x40] sm:$0xff]  ;;  %v706_v26 = vld [vmem:[%s2137_s21 + $0x8] sm:$0xff]  ;;  %v707_v28 = vld [vmem:[%s2137_s21 + $0x10] sm:$0xff] }
  0xad   : > { %s2148_s15 = scalar_lea.vmem [#allocation7], %s1252_s26  ;;  %v1292_v27 = vld [vmem:[%s2137_s21 + $0x48] sm:$0xff]  ;;  %v1293_v29 = vld [vmem:[%s2137_s21 + $0x50] sm:$0xff]  ;;  %v708_v30 = vld [vmem:[%s2137_s21 + $0x18] sm:$0xff]  ;;  %s1312_s24 = sshll.u32 %s2422_s13, 1 }
  0xae   : > { %v1263_v0 = vld [vmem:[%s2148_s15 + $0x28] sm:$0xff]  ;;  %v1262_v2 = vld [vmem:[%s2148_s15 + $0x20] sm:$0xff]  ;;  %v1294_v31 = vld [vmem:[%s2137_s21 + $0x58] sm:$0xff]  ;;  %s1039_s6 = sadd.s32 %s2421_s16, %s1312_s24  ;;  %s384_s11 = sand.u32 1, %s2423_s1  }
  0xaf   : > { %v431_v1 = vld [vmem:[%s2148_s15 + $0x8] sm:$0xff]  ;;  %1363 = vmatprep.subr.mxu0 %v1263_v0  ;;  %v430_v3 = vld [vmem:[%s2148_s15] sm:$0xff]  ;;  %v711_v36 = vld [vmem:[%s2137_s21 + $0x30] sm:$0xff]  ;;  %s1040_s5 = sadd.s32 7, %s1039_s6  ;;  %s1006_s12 = scalar_lea.vmem %s2424_s2, %s2421_s16 }
  0xb0   : > { %1379 = vmatprep.subr.mxu1 %v431_v1  ;;  %1364 = vmatpush3.msra.mxu0 %v1263_v0  ;;  %v1282_v8 = vld [vmem:[%s2148_s15 + $0x48] sm:$0xff]  ;;  %v1281_v16 = vld [vmem:[%s2148_s15 + $0x40] sm:$0xff]  ;;  %v1297_v37 = vld [vmem:[%s2137_s21 + $0x70] sm:$0xff]  ;;  %s1042_s10 = ssub.s32 0, %s1040_s5  ;;  %p1041_p10 = scmp.lt.s32.totalorder %s1040_s5, 0 }
  0xb1   : > { %1380 = vmatpush3.msra.mxu1 %v431_v1  ;;  %1365 = vmatprep.subr.mxu0 %v1262_v2  ;;  %v1301_v9 = vld [vmem:[%s2148_s15 + $0x68] sm:$0xff]  ;;  %v1300_v17 = vld [vmem:[%s2148_s15 + $0x60] sm:$0xff]  ;;  %v712_v38 = vld [vmem:[%s2137_s21 + $0x38] sm:$0xff]  ;;  %s1313_s3 = smin.u32 %s1042_s10, %s1040_s5  ;;  %s2425_s16 = sld [smem:[#allocation18_spill]] }
  0xb2   : > { %1381 = vmatprep.subr.mxu1 %v430_v3  ;;  %1366 = vmatpush3.msra.mxu0 %v1262_v2  ;;  %v709_v32 = vld [vmem:[%s2137_s21 + $0x20] sm:$0xff]  ;;  %v710_v34 = vld [vmem:[%s2137_s21 + $0x28] sm:$0xff]  ;;  %v1298_v39 = vld [vmem:[%s2137_s21 + $0x78] sm:$0xff]  ;;  %s1044_s9 = sand.u32 7, %s1313_s3   ;;  %s2426_s5 = sld [smem:[#allocation22_spill]] }
  0xb3   : > { %1382 = vmatpush3.msra.mxu1 %v430_v3  ;;  %1368 = vmatmul.mubr.msk.f32.vlgmr.msra.gmra.mxu0 %vm446_vm0, %v1254_v6  ;;  %v1295_v33 = vld [vmem:[%s2137_s21 + $0x60] sm:$0xff]  ;;  %v1296_v35 = vld [vmem:[%s2137_s21 + $0x68] sm:$0xff]  ;;  %s1045_s22 = ssub.s32 0, %s1044_s9  ;;  %s1251_s21 = sshll.u32 %s384_s11, 6 }
  0xb4   : > { %1384 = vmatmul.mubr.msk.f32.vlgmr.msra.gmra.mxu1 %vm446_vm0, %v421_v7  ;;  %1395 = vmatprep.subr.mxu0 %v1282_v8  ;;  %s2471_s22 = smov (!%p1041_p10, %s1045_s22), %s1044_s9  ;;  %v1310_v61 = vld [vmem:[%s1006_s12] ss:$0 sm:$0xff]  ;;  %s2232_s15 = scalar_lea.vmem [#allocation8], %s1251_s21 }
  0xb5   : > { %1411 = vmatprep.subr.mxu1 %v1301_v9  ;;  %1396 = vmatpush3.msra.mxu0 %v1282_v8  ;;  %p1315_p12 = scmp.lt.s32.totalorder %s2471_s22, 0  ;;  %s1051_s26 = sadd.s32 8, %s2471_s22 }
  0xb6   : > { %1370 = vmatprep.mubr.msk.f32.mxu0 %vm446_vm0, %v1255_v10  ;;  %1386 = vmatprep.mubr.msk.f32.mxu1 %vm446_vm0, %v422_v11  ;;  %s1063_s3 = sshll.u32 %s2232_s15, 4  ;;  %s2261_s2 = scalar_lea.sflag [#allocation4], %s384_s11  ;;  %s2253_s3 = int_to_ptr.vmem [resolvable:$true] %s1063_s3 }
  0xb7   : > { %1412 = vmatpush3.msra.mxu1 %v1301_v9  ;;  %1371 = vmatmul.mubr.msk.f32.gmra.mxu0 %vm446_vm0, %v1256_v12  ;;  %s2473_s26 = smov (!%p1315_p12, %s1051_s26), %s2471_s22  ;;  %s1317_s24 = sshll.u32 %s2425_s16, 6 }
  0xb8   : > { %1387 = vmatmul.mubr.msk.f32.gmra.mxu1 %vm446_vm0, %v423_v13  ;;  %1373 = vmatprep.mubr.msk.f32.mxu0 %vm446_vm0, %v1257_v14  ;;  %s1316_s13 = sshll.u32 %s2473_s26, 3  ;;  %s1671_s12 = scalar_lea.vmem %s2253_s3, 1024 }
  0xb9   : > { %1389 = vmatprep.mubr.msk.f32.mxu1 %vm446_vm0, %v424_v15  ;;  %1397 = vmatprep.subr.mxu0 %v1281_v16  ;;  %s1060_s6 = sadd.s32 %s1317_s24, %s1316_s13  ;;  %p1672_p6 = scmp.ne.s32.totalorder %s2253_s3, %s1671_s12 }
  0xba   : > { %1413 = vmatprep.subr.mxu1 %v1300_v17  ;;  %1398 = vmatpush3.msra.mxu0 %v1281_v16  ;;  %s1318_s10 = sshll.u32 %s1060_s6, 7  ;;  %p2428_p9 = scmp.ne.s32.totalorder %s2426_s5, 0 }
  0xbb   : > { %1414 = vmatpush3.msra.mxu1 %v1300_v17  ;;  %1374 = vmatmul.mubr.msk.f32.gmra.mxu0 %vm446_vm0, %v1258_v18  ;;  %s2251_s7 = scalar_lea.hbm %s2427_s4, %s1318_s10  ;;  %s1846_s21 = smov [#allocation8]  }
  0xbc   : > { %1390 = vmatmul.mubr.msk.f32.gmra.mxu1 %vm446_vm0, %v425_v19  ;;  %1376 = vmatprep.mubr.msk.f32.mxu0 %vm446_vm0, %v1259_v20  ;;  %p1673_p4 = pnand %p1672_p6, %p2428_p9  ;;  %s1675_s26 = sshll.u32 %s1846_s21, 4  ;;  %s1676_s26 = int_to_ptr.vmem [resolvable:$false] %s1675_s26 }
  0xbd   : > { %1392 = vmatprep.mubr.msk.f32.mxu1 %vm446_vm0, %v426_v21  ;;  %s1677_s16 = scalar_lea.vmem %s1676_s26, 2048  ;;  %p1678_p11 = scmp.lt.s32.totalorder %s2253_s3, %s1676_s26 }
  0xbe   : > { %p1674_p5 = pneg %p1673_p4  ;;  %p1679_p0 = scmp.lt.s32.totalorder %s1677_s16, %s1671_s12 }
  0xbf   : > { %1377 = vmatmul.mubr.msk.f32.gmra.mxu0 %vm446_vm0, %v1260_v22 }
  0xc0   : > { %1393 = vmatmul.mubr.msk.f32.gmra.mxu1 %vm446_vm0, %v427_v23  ;;  %1399 = vmatprep.mubr.msk.f32.mxu0 %vm446_vm0, %v705_v24  ;;  %p1680_p8 = por %p1679_p0, %p1678_p11 }
  0xc1   : > { %1415 = vmatprep.mubr.msk.f32.mxu1 %vm446_vm0, %v1291_v25 }
  0xc2   : > { %p1681_p1 = pnand %p1680_p8, %p1674_p5 }
  0xc3   : > { %1400 = vmatmul.mubr.msk.f32.vlgmr.msra.gmra.mxu0 %vm446_vm0, %v706_v26 }
  0xc4   : > { %1416 = vmatmul.mubr.msk.f32.vlgmr.msra.gmra.mxu1 %vm446_vm0, %v1292_v27  ;;  %1402 = vmatprep.mubr.msk.f32.mxu0 %vm446_vm0, %v707_v28 }
  0xc5   : > { %1418 = vmatprep.mubr.msk.f32.mxu1 %vm446_vm0, %v1293_v29 }
  0xc7   : > { %1403 = vmatmul.mubr.msk.f32.gmra.mxu0 %vm446_vm0, %v708_v30 }
  0xc8   : > { %1419 = vmatmul.mubr.msk.f32.gmra.mxu1 %vm446_vm0, %v1294_v31  ;;  %1405 = vmatprep.mubr.msk.f32.mxu0 %vm446_vm0, %v709_v32 }
  0xc9   : > { %1421 = vmatprep.mubr.msk.f32.mxu1 %vm446_vm0, %v1295_v33 }
  0xcb   : > { %1406 = vmatmul.mubr.msk.f32.gmra.mxu0 %vm446_vm0, %v710_v34 }
  0xcc   : > { %1422 = vmatmul.mubr.msk.f32.gmra.mxu1 %vm446_vm0, %v1296_v35  ;;  %1408 = vmatprep.mubr.msk.f32.mxu0 %vm446_vm0, %v711_v36 }
  0xcd   : > { %1424 = vmatprep.mubr.msk.f32.mxu1 %vm446_vm0, %v1297_v37 }
  0xcf   : > { %1409 = vmatmul.mubr.msk.f32.gmra.mxu0 %vm446_vm0, %v712_v38 }
  0xd0   : > { %1425 = vmatmul.mubr.msk.f32.gmra.mxu1 %vm446_vm0, %v1298_v39 }
 0x173   : > { %v1369_v40 = vpop.f32.mrf.mxu0 }
 0x174   : > { %v1385_v41 = vpop.f32.mrf.mxu1 }
 0x175   : > { %v537_v42 = vpop.f32.mrf.mxu0  ;;  %v672_v56 = vadd.f32 %v1385_v41, %v1369_v40 }
 0x176   : > { %v666_v43 = vpop.f32.mrf.mxu1 }
 0x177   : > { %v1372_v44 = vpop.f32.mrf.mxu0  ;;  %v667_v59 = vadd.f32 %v666_v43, %v537_v42 }
 0x178   : > { %v1388_v45 = vpop.f32.mrf.mxu1 }
 0x179   : > { %v547_v46 = vpop.f32.mrf.mxu0  ;;  %v682_v0 = vadd.f32 %v1388_v45, %v1372_v44 }
 0x17a   : > { %v676_v47 = vpop.f32.mrf.mxu1 }
 0x17b   : > { %v1375_v48 = vpop.f32.mrf.mxu0  ;;  %v677_v5 = vadd.f32 %v676_v47, %v547_v46 }
 0x17c   : > { %v1391_v49 = vpop.f32.mrf.mxu1 }
 0x17d   : > { %v557_v50 = vpop.f32.mrf.mxu0  ;;  %v692_v11 = vadd.f32 %v1391_v49, %v1375_v48 }
 0x17e   : > { %v686_v51 = vpop.f32.mrf.mxu1 }
 0x17f   : > { %v1378_v52 = vpop.f32.mrf.mxu0  ;;  %v687_v17 = vadd.f32 %v686_v51, %v557_v50 }
 0x180   : > { %v1394_v53 = vpop.f32.mrf.mxu1 }
 0x181   : > { %v567_v54 = vpop.f32.mrf.mxu0  ;;  %v702_v23 = vadd.f32 %v1394_v53, %v1378_v52 }
 0x182   : > { %v696_v55 = vpop.f32.mrf.mxu1 }
 0x183   : > { %v1401_v57 = vpop.f32.mrf.mxu0  ;;  %v697_v29 = vadd.f32 %v696_v55, %v567_v54 }
 0x184   : > { %v1417_v58 = vpop.f32.mrf.mxu1  ;;  %v848_v60 = vadd.f32 %v1401_v57, %v672_v56 }
 0x185   : > { %v808_v62 = vpop.f32.mrf.mxu0 }
 0x186   : > { %v959_v63 = vpop.f32.mrf.mxu1  ;;  %v999_v1 = vadd.f32 %v1417_v58, %v848_v60  ;;  %v847_v2 = vadd.f32 %v808_v62, %v667_v59 }
 0x187   : > { %v1404_v3 = vpop.f32.mrf.mxu0 }
 0x188   : > { %v1420_v4 = vpop.f32.mrf.mxu1  ;;  %v1015_v6 = vadd.f32 %v1310_v61, %v999_v1  ;;  %v998_v7 = vadd.f32 %v959_v63, %v847_v2  ;;  %v850_v8 = vadd.f32 %v1404_v3, %v682_v0 }
 0x189   : > { %v818_v9 = vpop.f32.mrf.mxu0 }
 0x18a   : > { %v969_v10 = vpop.f32.mrf.mxu1  ;;  %1023 = vst.msk [vmem:[%s2232_s15 + $0x8] sm:$0xff] %vm446_vm0, %v1015_v6  ;;  %v1014_v12 = vadd.f32 %v1310_v61, %v998_v7  ;;  %v1001_v13 = vadd.f32 %v1420_v4, %v850_v8  ;;  %v849_v14 = vadd.f32 %v818_v9, %v677_v5 }
 0x18b   : > { %v1407_v15 = vpop.f32.mrf.mxu0 }
 0x18c   : > { %v1423_v16 = vpop.f32.mrf.mxu1  ;;  %1022 = vst.msk [vmem:[%s2232_s15] sm:$0xff] %vm446_vm0, %v1014_v12  ;;  %v1017_v18 = vadd.f32 %v1310_v61, %v1001_v13  ;;  %v1000_v19 = vadd.f32 %v969_v10, %v849_v14  ;;  %v852_v20 = vadd.f32 %v1407_v15, %v692_v11 }
 0x18d   : > { %v828_v21 = vpop.f32.mrf.mxu0 }
 0x18e   : > { %v979_v22 = vpop.f32.mrf.mxu1  ;;  %1025 = vst.msk [vmem:[%s2232_s15 + $0x18] sm:$0xff] %vm446_vm0, %v1017_v18  ;;  %v1016_v24 = vadd.f32 %v1310_v61, %v1000_v19  ;;  %v1003_v25 = vadd.f32 %v1423_v16, %v852_v20  ;;  %v851_v26 = vadd.f32 %v828_v21, %v687_v17 }
 0x18f   : > { %v1410_v27 = vpop.f32.mrf.mxu0 }
 0x190   : > { %v1426_v28 = vpop.f32.mrf.mxu1  ;;  %1024 = vst.msk [vmem:[%s2232_s15 + $0x10] sm:$0xff] %vm446_vm0, %v1016_v24  ;;  %v1019_v30 = vadd.f32 %v1310_v61, %v1003_v25  ;;  %v1002_v31 = vadd.f32 %v979_v22, %v851_v26  ;;  %v854_v32 = vadd.f32 %v1410_v27, %v702_v23 }
 0x191   : > { %v838_v33 = vpop.f32.mrf.mxu0 }
 0x192   : > { %1027 = vst.msk [vmem:[%s2232_s15 + $0x28] sm:$0xff] %vm446_vm0, %v1019_v30  ;;  %v1018_v34 = vadd.f32 %v1310_v61, %v1002_v31  ;;  %v1005_v35 = vadd.f32 %v1426_v28, %v854_v32  ;;  %v853_v36 = vadd.f32 %v838_v33, %v697_v29  ;;  %v989_v37 = vpop.f32.mrf.mxu1 }
 0x194   : > { %1026 = vst.msk [vmem:[%s2232_s15 + $0x20] sm:$0xff] %vm446_vm0, %v1018_v34  ;;  %v1021_v38 = vadd.f32 %v1310_v61, %v1005_v35  ;;  %v1004_v39 = vadd.f32 %v989_v37, %v853_v36 }
 0x196   : > { %1029 = vst.msk [vmem:[%s2232_s15 + $0x38] sm:$0xff] %vm446_vm0, %v1021_v38  ;;  %v1020_v40 = vadd.f32 %v1310_v61, %v1004_v39 }
 0x198   : > { %1028 = vst.msk [vmem:[%s2232_s15 + $0x30] sm:$0xff] %vm446_vm0, %v1020_v40 }
 0x199   : > { %1684 = shalt.err (!%p1681_p1)
}
 0x19a   : > { %s1685_s1 = scalar_lea.hbm %s2251_s7, 1024  ;;  %s1689_s13 = scalar_lea.hbm %s2427_s4, 16384 }
 0x19b   : > { %p1686_p3 = scmp.ne.s32.totalorder %s2251_s7, %s1685_s1  ;;  %p1690_p7 = scmp.lt.s32.totalorder %s2251_s7, %s2427_s4 }
 0x19c   : > { %p1691_p10 = scmp.lt.s32.totalorder %s1689_s13, %s1685_s1 }
 0x19d   : > { %p1687_p13 = pnand %p1686_p3, %p2428_p9 }
 0x19e   : > { %p1692_p12 = por %p1691_p10, %p1690_p7 }
 0x19f   : > { %p1688_p2 = pneg %p1687_p13 }
 0x1a1   : > { %p1693_p6 = pnand %p1692_p12, %p1688_p2 }
 0x1a3   : > { %1696 = shalt.err (!%p1693_p6)
}
 0x1a4   : > { %s1847_s10 = smov 128   ;;  %s1848_s9 = smov 8  }
 0x1a5   : > { %1435 = dma.vmem_to_hbm [thread:$0]  (%p2428_p9), %s2253_s3, 1024, %s2251_s7, %s2261_s2, %s1847_s10, %s1847_s10, %s1848_s9  }
 0x1a6 PF: > { %s2429_s22 = sld [smem:[#allocation13_spill]]  ;;  %p1455_p4 = scmp.ge.s32.totalorder %s1839_s30, 2 }
 0x1a7   : > { %s2430_s12 = sld [smem:[#allocation23_spill]] }
 0x1ac   : > { %s1078_s21 = sand.u32 1, %s2429_s22  }
 0x1ad   : > { %p2431_p5 = scmp.ne.s32.totalorder %s2430_s12, 0  ;;  %s1079_s26 = scalar_lea.sflag [#allocation4], %s1078_s21 }
 0x1af   : > { %p1449_p11 = pnand %p1455_p4, %p2431_p5 }
 0x1b1   : > { %p1450_p0 = pneg %p1449_p11 }
 0x1b3   : > { %1774 = dma.done.wait (%p1450_p0), %s1079_s26, 1024  }
 0x1b4   : > { %1776 = vsyncadd (%p1450_p0), %s1079_s26, 4294966272  ;;  %s23_s30 = sadd.s32 1, %s1839_s30   ;;  %s2433_s15 = sld [smem:[#allocation14_spill]] }
 0x1b5   : > { %p2289_p8 = scmp.ge.s32.totalorder %s23_s30, 18   ;;  %s2434_s21 = sld [smem:[#allocation15_spill]] }
 0x1b6   : > { %s2435_s5 = smov %s2453_s18  ;;  %s2436_s3 = sld [smem:[#allocation25_spill]] }
 0x1b7   : > { %s2437_s7 = sld [smem:[#allocation26_spill]]  ;;  %s2439_s16 = smov %s1787_s17 }
 0x1b8   : > { %s2440_s17 = smov %s2069_s25  ;;  %s2441_s18 = smov %s1795_s19 }
 0x1b9   : > { %s2442_s19 = smov %s1799_s20  ;;  %s2443_s20 = smov %s2102_s14 }
 0x1ba   : > { %s2444_s22 = smov %s1811_s23  ;;  %s2445_s23 = smov %s2043_s8 }
 0x1bb   : > { %s2446_s24 = smov %s1827_s27  ;;  %s2447_s25 = smov %s1831_s28 }
 0x1bc   : > { %s2448_s26 = smov %s1835_s29  ;;  %s2449_s27 = smov %s2435_s5 }
 0x1bd   : > { %s2450_s28 = smov %s2436_s3  ;;  %s2451_s29 = smov %s2437_s7 }
 0x1be   :  { %22 = sbr.rel (!%p2289_p8) target bundleno = 18 (0x12), region = 105 }
 0x1c3   :  { %1084 = vsyncpa [#allocation3], 1 }
 0x1c4   :  { %1086 = vsyncpa [#allocation3 + $0x1], 1 }
 0x1c5   :  { %1087 = vsyncpa [#allocation6], 1 }
 0x1c6   :  { %1089 = vsyncpa [#allocation6 + $0x1], 1 }
 0x1c7   :  { %1090 = vsyncpa [#allocation4], 1 }
 0x1c8   :  { %1092 = vsyncpa [#allocation4 + $0x1], 1 }

</bundles_post_ra>
